<compile_context>
chip_gen: v6e
topology: v6e:2x2x1
jax: 0.10.0
libtpu: 0.0.40
codegen_flags: <defaults>
</compile_context>

<pallas_src>
import functools

import jax
import jax.numpy as jnp
from jax import lax
from jax.experimental import pallas as pl
from jax.experimental.pallas import tpu as pltpu


def _conv2d_same_kernel(cols_ref, w_ref, b_ref, o_ref, *, Nb, HW):
    """One batch block (Nb elements) per grid step -- a single MXU matmul.

    cols_ref: (K*K*C_in, Nb*H*W)  bf16 im2col columns, lane axis = Nb*H*W
    w_ref:    (C_out, K*K*C_in)   bf16 flattened weights, (kh, kw, cin) order
    b_ref:    (C_out, 1)          f32 bias
    o_ref:    (Nb, C_out, H*W)    lane-dense f32 output (H*W multiple of 128)
    """
    # One deep matmul for the whole batch block: weights stay stationary,
    # Nb*H*W columns stream through the MXU (amortizes pipeline fill/drain).
    acc = jnp.dot(w_ref[...], cols_ref[...],
                  preferred_element_type=jnp.float32)        # (C_out, Nb*HW)
    acc = acc + b_ref[...]                                   # lane-broadcast add (f32)
    for b in range(Nb):                                      # static, 128-aligned slices
        o_ref[b] = acc[:, b * HW:(b + 1) * HW].astype(o_ref.dtype)


def _pick_batch_block(N, *, kkc, hw, c_out, col_itemsize, out_itemsize,
                      vmem_budget_bytes):
    """Largest divisor of N whose double-buffered block fits the VMEM budget.

    No forced multi-step split: for tiny problems Nb == N (grid of 1) avoids
    the ~0.35us fixed per-step pipeline overhead.  Megacore splitting only
    pays off once each step is compute-bound (see TODO on H-tiling).
    """
    fixed = 2 * (c_out * kkc * col_itemsize + c_out * 4)     # w + bias (dbl-buffered)

    def block_bytes(nb):
        return fixed + 2 * nb * hw * (kkc * col_itemsize + c_out * out_itemsize)

    best = None
    for cand in range(1, N + 1):
        if N % cand == 0 and block_bytes(cand) <= vmem_budget_bytes:
            best = cand
    if best is None:
        raise ValueError(
            "conv2d_same: a single batch element does not fit the VMEM budget "
            f"({block_bytes(1)} > {vmem_budget_bytes} bytes). "
            "TODO(synk): add an H-tiled grid axis with a (K-1)-row halo.")
    return best, block_bytes(best)


def conv2d_same(x_nchw, weight_oihw, bias, kernel_size, *,
                compute_dtype=jnp.bfloat16,
                vmem_budget_bytes=24 << 20):
    """Equivalent of Conv2dSame.forward (reflection pad + conv, stride 1), NCHW."""
    N, C_in, H, W = x_nchw.shape
    C_out = weight_oihw.shape[0]
    K = kernel_size
    HW = H * W
    KKC = K * K * C_in
    assert HW % 128 == 0, "H*W must be a multiple of 128 lanes for this kernel"

    # Same asymmetric padding as the PyTorch module:
    # ReflectionPad2d((ka, kb, ka, kb)) -> left=ka, right=kb, top=ka, bottom=kb.
    ka = K // 2
    kb = ka - 1 if K % 2 == 0 else ka
    assert ka <= H - 1 and ka <= W - 1, "reflection pad wider than input"

    # ---- wrapper-side glue (XLA, one pass): reflection pad + im2col --------
    x_pad = jnp.pad(x_nchw, ((0, 0), (0, 0), (ka, kb), (ka, kb)),
                    mode="reflect")                           # N,C,H+K-1,W+K-1
    # (kh, kw) taps -> (K*K, N, C_in, H, W) -> (K*K, C_in, N, H, W)
    taps = [x_pad[:, :, kh:kh + H, kw:kw + W]
            for kh in range(K) for kw in range(K)]
    cols = jnp.stack(taps, axis=0).transpose(0, 2, 1, 3, 4)
    cols = cols.reshape(KKC, N * HW).astype(compute_dtype)    # row = tap*C_in + cin

    # Weights flattened to (C_out, K*K*C_in) in matching (kh, kw, cin) order.
    w_mat = jnp.transpose(weight_oihw, (0, 2, 3, 1)).reshape(C_out, KKC)
    w_mat = w_mat.astype(compute_dtype)
    b_mat = bias.reshape(C_out, 1).astype(jnp.float32)        # bias stays f32

    col_itemsize = jnp.dtype(compute_dtype).itemsize
    out_itemsize = jnp.dtype(x_nchw.dtype).itemsize
    Nb, block_bytes = _pick_batch_block(
        N, kkc=KKC, hw=HW, c_out=C_out,
        col_itemsize=col_itemsize, out_itemsize=out_itemsize,
        vmem_budget_bytes=vmem_budget_bytes)
    grid = (N // Nb,)

    # Explicit VMEM cap derived from the block accounting (v7x-safe ceiling).
    vmem_limit = int(min(28 << 20, max(16 << 20, 2 * block_bytes)))

    kernel = functools.partial(_conv2d_same_kernel, Nb=Nb, HW=HW)

    cost = pl.CostEstimate(
        flops=2 * N * C_out * HW * KKC,
        transcendentals=0,
        bytes_accessed=int(cols.size * col_itemsize + w_mat.size * col_itemsize
                           + b_mat.size * 4 + N * C_out * HW * out_itemsize))

    out_flat = pl.pallas_call(
        kernel,
        out_shape=jax.ShapeDtypeStruct((N, C_out, HW), x_nchw.dtype),
        grid_spec=pltpu.PrefetchScalarGridSpec(
            num_scalar_prefetch=0,
            grid=grid,
            in_specs=[
                pl.BlockSpec((KKC, Nb * HW), lambda n: (0, n)),
                pl.BlockSpec((C_out, KKC), lambda n: (0, 0)),
                pl.BlockSpec((C_out, 1), lambda n: (0, 0)),
            ],
            out_specs=pl.BlockSpec((Nb, C_out, HW), lambda n: (n, 0, 0)),
        ),
        compiler_params=pltpu.CompilerParams(
            dimension_semantics=("parallel",),
            vmem_limit_bytes=vmem_limit),
        cost_estimate=cost,
    )(cols, w_mat, b_mat)

    # (N, C_out, H*W) is already NCHW-contiguous: free reshape, no transpose.
    return out_flat.reshape(N, C_out, H, W)


def _reference_f32(x_nchw, weight_oihw, bias, kernel_size):
    """Pure-JAX f32 reference (reflection pad + conv)."""
    K = kernel_size
    ka = K // 2
    kb = ka - 1 if K % 2 == 0 else ka
    x_pad = jnp.pad(x_nchw, ((0, 0), (0, 0), (ka, kb), (ka, kb)),
                    mode="reflect")
    out = lax.conv_general_dilated(
        x_pad, weight_oihw, window_strides=(1, 1), padding="VALID",
        dimension_numbers=("NCHW", "OIHW", "NCHW"))
    return out + bias[None, :, None, None]


def _reference_bf16(x_nchw, weight_oihw, bias, kernel_size):
    """Reference doing the same math as the kernel: bf16 taps, f32 accumulation."""
    K = kernel_size
    ka = K // 2
    kb = ka - 1 if K % 2 == 0 else ka
    x_pad = jnp.pad(x_nchw, ((0, 0), (0, 0), (ka, kb), (ka, kb)),
                    mode="reflect").astype(jnp.bfloat16)
    out = lax.conv_general_dilated(
        x_pad, weight_oihw.astype(jnp.bfloat16), window_strides=(1, 1),
        padding="VALID", dimension_numbers=("NCHW", "OIHW", "NCHW"),
        preferred_element_type=jnp.float32)
    return out + bias[None, :, None, None]


if __name__ == "__main__":
    # Small shapes consistent with the module: N=2, C_in=4, C_out=8, H=W=16, K=3.
    N, C_in, C_out, H, W, K = 2, 4, 8, 16, 16, 3

    key = jax.random.PRNGKey(0)
    kx, kw_, kb_ = jax.random.split(key, 3)

    x = jax.random.normal(kx, (N, C_in, H, W), dtype=jnp.float32)
    # Deterministic init mimicking PyTorch's default uniform(-1/sqrt(fan_in), ...)
    fan_in = C_in * K * K
    bound = 1.0 / (fan_in ** 0.5)
    weight = jax.random.uniform(kw_, (C_out, C_in, K, K), dtype=jnp.float32,
                                minval=-bound, maxval=bound)
    bias = jax.random.uniform(kb_, (C_out,), dtype=jnp.float32,
                              minval=-bound, maxval=bound)

    out = jax.block_until_ready(conv2d_same(x, weight, bias, K))
    assert out.shape == (N, C_out, H, W), out.shape

    # Tight check vs. a reference doing identical math (bf16 inputs, f32 acc):
    # catches any im2col / weight-flattening / padding ordering bug.
    ref_bf16 = jax.block_until_ready(_reference_bf16(x, weight, bias, K))
    assert jnp.allclose(out, ref_bf16, atol=1e-3, rtol=1e-3), \
        "mismatch vs bf16-input reference"

    # Loose sanity check vs. the full-f32 reference (tolerance covers the
    # bf16 quantization of activations/weights; accumulation stays f32).
    ref_f32 = jax.block_until_ready(_reference_f32(x, weight, bias, K))
    assert jnp.allclose(out, ref_f32, atol=2e-2, rtol=2e-2), \
        "mismatch vs f32 reference"

    print("KERNEL_OK")
</pallas_src>

<mosaic_0001>
module attributes {stable_mosaic.version = 11 : i64} {
  func.func @_conv2d_same_kernel(%arg0: i32, %arg1: memref<36x512xbf16, #tpu.memory_space<vmem>>, %arg2: memref<8x36xbf16, #tpu.memory_space<vmem>>, %arg3: memref<8x1xf32, #tpu.memory_space<vmem>>, %arg4: memref<2x8x256xf32, #tpu.memory_space<vmem>>) attributes {dimension_semantics = [#tpu.dimension_semantics<parallel>], iteration_bounds = array<i64: 1>, scalar_prefetch = 0 : i64, scratch_operands = 0 : i64, tpu.core_type = #tpu.core_type<tc>, window_params = [{transform_indices = @transform_0, window_bounds = array<i64: 36, 512>}, {pipeline_mode = #tpu.pipeline_mode<synchronous>, transform_indices = @transform_1, window_bounds = array<i64: 8, 36>}, {pipeline_mode = #tpu.pipeline_mode<synchronous>, transform_indices = @transform_2, window_bounds = array<i64: 8, 1>}, {transform_indices = @transform_3, window_bounds = array<i64: 2, 8, 256>}]} {
    %c0 = arith.constant 0 : index
    %c0_0 = arith.constant 0 : index
    %0 = vector.load %arg2[%c0, %c0_0] : memref<8x36xbf16, #tpu.memory_space<vmem>>, vector<8x36xbf16>
    %c0_1 = arith.constant 0 : index
    %c0_2 = arith.constant 0 : index
    %1 = vector.load %arg1[%c0_1, %c0_2] : memref<36x512xbf16, #tpu.memory_space<vmem>>, vector<36x512xbf16>
    %cst = arith.constant dense<0.000000e+00> : vector<8x512xf32>
    %2 = tpu.matmul %0, %1, %cst {dimension_numbers = #tpu.dot_dimension_numbers<[1], [0], [0], [1], [0, 0, 1, 1], [], []>} : vector<8x36xbf16>, vector<36x512xbf16>, vector<8x512xf32> -> vector<8x512xf32>
    %c0_3 = arith.constant 0 : index
    %c0_4 = arith.constant 0 : index
    %3 = vector.load %arg3[%c0_3, %c0_4] : memref<8x1xf32, #tpu.memory_space<vmem>>, vector<8x1xf32>
    %4 = vector.broadcast %3 : vector<8x1xf32> to vector<8x512xf32>
    %5 = arith.addf %2, %4 : vector<8x512xf32>
    %6 = vector.extract_strided_slice %5 {offsets = [0, 0], sizes = [8, 256], strides = [1, 1]} : vector<8x512xf32> to vector<8x256xf32>
    %c0_5 = arith.constant 0 : index
    %c0_6 = arith.constant 0 : index
    %c0_7 = arith.constant 0 : index
    %7 = vector.load %arg4[%c0_5, %c0_6, %c0_7] : memref<2x8x256xf32, #tpu.memory_space<vmem>>, vector<1x8x256xf32>
    %8 = vector.shape_cast %7 : vector<1x8x256xf32> to vector<8x256xf32>
    %9 = vector.shape_cast %6 : vector<8x256xf32> to vector<1x8x256xf32>
    tpu.vector_store %arg4[%c0_5, %c0_6, %c0_7], %9 {strides = array<i32>} : memref<2x8x256xf32, #tpu.memory_space<vmem>>, vector<1x8x256xf32>,
    %10 = vector.extract_strided_slice %5 {offsets = [0, 256], sizes = [8, 256], strides = [1, 1]} : vector<8x512xf32> to vector<8x256xf32>
    %c1 = arith.constant 1 : index
    %c0_8 = arith.constant 0 : index
    %c0_9 = arith.constant 0 : index
    %11 = vector.load %arg4[%c1, %c0_8, %c0_9] : memref<2x8x256xf32, #tpu.memory_space<vmem>>, vector<1x8x256xf32>
    %12 = vector.shape_cast %11 : vector<1x8x256xf32> to vector<8x256xf32>
    %13 = vector.shape_cast %10 : vector<8x256xf32> to vector<1x8x256xf32>
    tpu.vector_store %arg4[%c1, %c0_8, %c0_9], %13 {strides = array<i32>} : memref<2x8x256xf32, #tpu.memory_space<vmem>>, vector<1x8x256xf32>,
    return
  }
  func.func @transform_0(%arg0: i32) -> (i32, i32) {
    %c0_i32 = arith.constant 0 : i32
    %c0_i32_0 = arith.constant 0 : i32
    return %c0_i32, %arg0 : i32, i32
  }
  func.func @transform_1(%arg0: i32) -> (i32, i32) {
    %c0_i32 = arith.constant 0 : i32
    %c0_i32_0 = arith.constant 0 : i32
    %c0_i32_1 = arith.constant 0 : i32
    return %c0_i32, %c0_i32_0 : i32, i32
  }
  func.func @transform_2(%arg0: i32) -> (i32, i32) {
    %c0_i32 = arith.constant 0 : i32
    %c0_i32_0 = arith.constant 0 : i32
    %c0_i32_1 = arith.constant 0 : i32
    return %c0_i32, %c0_i32_0 : i32, i32
  }
  func.func @transform_3(%arg0: i32) -> (i32, i32, i32) {
    %c0_i32 = arith.constant 0 : i32
    %c0_i32_0 = arith.constant 0 : i32
    %c0_i32_1 = arith.constant 0 : i32
    return %arg0, %c0_i32, %c0_i32_0 : i32, i32, i32
  }
}

</mosaic_0001>

<bundles_post_ra>
// kernel: tpu_custom_call.1
= control target key start
LH: loop header
LB: loop body
LE: loop exit
PB: predicated region body
PF: predicated region fallthrough
CT: control target
= control target key end

     0   :  { %8 = vsyncpa [#allocation3], 0  ;;  %s343_s0 = inlined_call_operand.hbm [shape: bf16[36,512], index: 0, kind: input, shape index: {}]   ;;  %s344_s1 = inlined_call_operand.vmem [shape: bf16[8,36], index: 1, kind: input, shape index: {}]   ;;  %s345_s2 = inlined_call_operand.vmem [shape: f32[8,1], index: 2, kind: input, shape index: {}]   ;;  %s346_s3 = inlined_call_operand.hbm [shape: f32[2,8,256], index: 3, kind: output, shape index: {}]  }
   0x1   :  { %9 = vsyncpa [#allocation4], 0  ;;  %s300_s12 = smov [#allocation2]  }
   0x2   :  { %s15_s13 = sshll.u32 %s300_s12, 4  ;;  %s16_s13 = int_to_ptr.vmem [resolvable:$true] %s15_s13 }
   0x3   :  { %s264_s14 = scalar_lea.vmem %s16_s13, 1280  ;;  %p269_p1 = scmp.lt.s32.totalorder %s16_s13, %s16_s13 }
   0x4   :  { %p265_p0 = scmp.ne.s32.totalorder %s16_s13, %s264_s14  ;;  %p270_p2 = scmp.lt.s32.totalorder %s264_s14, %s264_s14 }
   0x6   :  { %p271_p3 = por %p270_p2, %p269_p1 }
   0x8   :  { %p272_p4 = pnand %p271_p3, %p265_p0 }
   0xa   :  { %275 = shalt.err (!%p272_p4)
}
   0xb   :  { %s301_s15 = smov 256   ;;  %s302_s16 = smov 16  }
   0xc   :  { %21 = dma.hbm_to_vmem [thread:$0]  %s343_s0, 1280, %s16_s13, [#allocation3], %s301_s15, %s301_s15, %s302_s16  }
   0xd   :  { %296 = dma.done.wait [#allocation3], 1280  }
   0xe   :  { %297 = vsyncadd [#allocation3], 4294966016  ;;  %v303_v0 = vmov 0   ;;  %v39_v1 = vld [vmem:[#allocation2 + $0x40] sm:$0x33]  ;;  %vm101_vm0 = vcmask 1041408  }
   0xf   :  { %146 = vmatprep.mubr.bf16.mxu0 %v303_v0  ;;  %187 = vmatprep.mubr.bf16.mxu1 %v303_v0  ;;  %v40_v2 = vld [vmem:[#allocation2 + $0x48] sm:$0x33]  ;;  %v227_v3 = vcombine.high %v39_v1, %v39_v1  ;;  %v226_v5 = vcombine.low %v39_v1, %v39_v1  ;;  %v244_v7 = vld [vmem:[#allocation2 + $0x24] ss:$16 sps:$4 sm:$0xff]   ;;  %v248_v11 = vld [vmem:[#allocation2 + $0x20] ss:$16 sps:$4 sm:$0xff]  }
  0x10   :  { %239 = vset.pattern.permute.xlu0 %v303_v0  ;;  %v229_v4 = vcombine.high %v40_v2, %v40_v2  ;;  %v228_v6 = vcombine.low %v40_v2, %v40_v2  ;;  %v246_v8 = vld [vmem:[#allocation2 + $0x2c] ss:$16 sps:$4 sm:$0xff]   ;;  %v249_v12 = vld [vmem:[#allocation2 + $0x28] ss:$16 sps:$4 sm:$0xff]   ;;  %v250_v13 = vld [vmem:[#allocation2 + $0x4] ss:$16 sps:$4 sm:$0xff]  }
  0x11   :  { %230 = vmatprep.subr.msk.bf16.mxu0 %vm101_vm0, %v227_v3  ;;  %v103_v9 = vsel %vm101_vm0, %v226_v5, 0  ;;  %v252_v14 = vld [vmem:[#allocation2 + $0xc] ss:$16 sps:$4 sm:$0xff]   ;;  %v41_v15 = vld [vmem:[%s345_s2] sm:$0xff]  ;;  %v255_v17 = vld [vmem:[#allocation2 + $0x8] ss:$16 sps:$4 sm:$0xff]  }
  0x12   :  { %232 = vmatprep.subr.msk.bf16.mxu1 %vm101_vm0, %v229_v4  ;;  %v109_v10 = vsel %vm101_vm0, %v228_v6, 0  ;;  %125 = vmatpush1.bf16.msra.mxu0 %v103_v9  ;;  %v254_v16 = vld [vmem:[#allocation2] ss:$16 sps:$4 sm:$0xff]   ;;  %vm97_vm1 = vcmask 293888   ;;  %s304_s2 = smov [#allocation5]  }
  0x13   :  { %166 = vmatpush1.bf16.msra.mxu1 %v109_v10  ;;  %126 = vmatprep.subr.bf16.mxu0 %v244_v7  ;;  %v30_v18 = vld [vmem:[%s344_s1] sm:$0xf]  ;;  %s206_s22 = sshll.u32 %s304_s2, 4  ;;  %s207_s22 = int_to_ptr.vmem [resolvable:$true] %s206_s22 }
  0x14   :  { %167 = vmatprep.subr.bf16.mxu1 %v246_v8  ;;  %44 = vperm.xlu0 %239, %v41_v15   ;;  %s276_s1 = scalar_lea.vmem %s207_s22, 512  ;;  %p281_p6 = scmp.lt.s32.totalorder %s207_s22, %s207_s22 }
  0x15   :  { %p277_p5 = scmp.ne.s32.totalorder %s207_s22, %s276_s1  ;;  %p282_p7 = scmp.lt.s32.totalorder %s276_s1, %s276_s1 }
  0x16   :  { %127 = vmatpush1.bf16.msra.mxu0 %v248_v11 }
  0x17   :  { %168 = vmatpush1.bf16.msra.mxu1 %v249_v12  ;;  %128 = vmatprep.subr.bf16.mxu0 %v250_v13  ;;  %p283_p8 = por %p282_p7, %p281_p6 }
  0x18   :  { %169 = vmatprep.subr.bf16.mxu1 %v252_v14 }
  0x19   :  { %p284_p9 = pnand %p283_p8, %p277_p5 }
  0x1a   :  { %129 = vmatpush1.bf16.msra.mxu0 %v254_v16 }
  0x1b   :  { %170 = vmatpush1.bf16.msra.mxu1 %v255_v17 }
  0x1d   :  { %231 = vmatmul.mubr.msk.bf16.vlgmr.msra.gmra.mxu0 %vm97_vm1, %v30_v18 }
  0x1e   :  { %233 = vmatmul.mubr.msk.bf16.vlgmr.msra.gmra.mxu1 %vm97_vm1, %v30_v18 }
  0x8f   :  { %v45_v19 = vpop.permute.xlu0 %44 }
  0xdd   :  { %v148_v20 = vpop.f32.mrf.mxu0 }
  0xde   :  { %v189_v21 = vpop.f32.mrf.mxu1  ;;  %v149_v22 = vadd.f32 %v148_v20, %v45_v19 }
  0xdf   :  { %v190_v23 = vadd.f32 %v189_v21, %v45_v19  ;;  %v150_v24 = vpop.f32.mrf.mxu0 }
  0xe0   :  { %v191_v25 = vpop.f32.mrf.mxu1  ;;  %196 = vst [vmem:[#allocation5] sm:$0xff] %v149_v22  ;;  %v151_v26 = vadd.f32 %v150_v24, %v45_v19 }
  0xe1   :  { %199 = vst [vmem:[#allocation5 + $0x10] sm:$0xff] %v190_v23  ;;  %v192_v27 = vadd.f32 %v191_v25, %v45_v19  ;;  %v152_v28 = vpop.f32.mrf.mxu0 }
  0xe2   :  { %v193_v29 = vpop.f32.mrf.mxu1  ;;  %197 = vst [vmem:[#allocation5 + $0x8] sm:$0xff] %v151_v26 }
  0xe3   :  { %200 = vst [vmem:[#allocation5 + $0x18] sm:$0xff] %v192_v27  ;;  %v153_v30 = vpop.f32.mrf.mxu0 }
  0xe4   :  { %v194_v31 = vpop.f32.mrf.mxu1 }
  0xe5   :  { %287 = shalt.err (!%p284_p9)
}
  0xe6   :  { %212 = dma.vmem_to_hbm [thread:$0]  %s207_s22, 512, %s346_s3, [#allocation4], %s301_s15, %s301_s15, %s302_s16  }
  0xe7   :  { %298 = dma.done.wait [#allocation4], 512  }
  0xe8   :  { %299 = vsyncadd [#allocation4], 4294966784 }
  0xe9   :  { %216 = vsyncpa [#allocation3], 1 }
  0xea   :  { %217 = vsyncpa [#allocation4], 1 }

</bundles_post_ra>
